<compile_context>
chip_gen: v5e
topology: v5e:2x2
jax: 0.10.0
libtpu: 0.0.40
codegen_flags: <defaults>
</compile_context>

<pallas_src>
import jax
import jax.numpy as jnp
import numpy as np
from jax.experimental import pallas as pl
from jax.experimental.pallas import tpu as pltpu

OUT_PAD = 128  # lane-dense padding for the scalar output head


# ----------------------------------------------------------------------------
# Pallas kernel: hoisted input projection + unrolled LSTM recurrence +
# 4-layer MLP head.  Everything is tiny and stays resident in VMEM
# (gridless pallas_call, single invocation).
# ----------------------------------------------------------------------------
def lstm_mlp_kernel(
    x_ref,      # (T*B, A)         float32, step-major: row = t*B + b
    wih_ref,    # (A, 4H)          float32  (transposed weight_ih_l0)
    whh_ref,    # (H, 4H)          float32  (transposed weight_hh_l0)
    b_ref,      # (1, 4H)          float32  (bias_ih_l0 + bias_hh_l0)
    w1_ref,     # (H, N1)
    b1_ref,     # (1, N1)
    w2_ref,     # (N1, N2)
    b2_ref,     # (1, N2)
    w3_ref,     # (N2, N3)
    b3_ref,     # (1, N3)
    w4_ref,     # (N3, OUT_PAD)    (Linear->1 padded with zero lanes)
    b4_ref,     # (1, OUT_PAD)
    out_ref,    # (B, OUT_PAD)
):
    TB, A = x_ref.shape
    H = whh_ref.shape[0]
    B = out_ref.shape[0]
    T = TB // B

    whh = whh_ref[...]                              # (H, 4H)

    # --- Hoisted input projection: one matmul for all T steps + bias. -------
    gates_x = (
        jnp.dot(x_ref[...], wih_ref[...], preferred_element_type=jnp.float32)
        + b_ref[...]
    )                                               # (T*B, 4H)

    h = jnp.zeros((B, H), jnp.float32)
    c = jnp.zeros((B, H), jnp.float32)

    # --- Fully-unrolled recurrence (T static & small): one MXU matmul and ---
    # --- two lane-dense EUP activation passes + one tanh(c) per step.     ---
    for t in range(T):
        gates = gates_x[t * B:(t + 1) * B, :] + jnp.dot(
            h, whh, preferred_element_type=jnp.float32
        )                                           # (B, 4H), order i,f,g,o
        sig = jax.nn.sigmoid(gates)                 # lane-dense over full 4H
        th = jnp.tanh(gates)
        i_g = sig[:, 0 * H:1 * H]
        f_g = sig[:, 1 * H:2 * H]
        g_g = th[:, 2 * H:3 * H]
        o_g = sig[:, 3 * H:4 * H]
        c = f_g * c + i_g * g_g
        h = o_g * jnp.tanh(c)

    # --- MLP head: Linear -> ReLU (x3) -> Linear(->1, lane-padded). --------
    z = jnp.maximum(
        jnp.dot(h, w1_ref[...], preferred_element_type=jnp.float32) + b1_ref[...], 0.0)
    z = jnp.maximum(
        jnp.dot(z, w2_ref[...], preferred_element_type=jnp.float32) + b2_ref[...], 0.0)
    z = jnp.maximum(
        jnp.dot(z, w3_ref[...], preferred_element_type=jnp.float32) + b3_ref[...], 0.0)
    out_ref[...] = (
        jnp.dot(z, w4_ref[...], preferred_element_type=jnp.float32) + b4_ref[...]
    )                                               # (B, OUT_PAD), lane 0 = result


@jax.jit
def fc_model_forward(x, wih, whh, b, w1, b1, w2, b2, w3, b3, w4, b4):
    """x: (B, T, alphabet) float32 -> (B, 1) float32."""
    B, T, A = x.shape
    n3 = w4.shape[0]

    # Step-major flatten (layout plumbing in the wrapper; negligible for these
    # shapes) so the kernel needs no in-kernel reshape and per-step gate
    # slices are contiguous.
    x_tb = jnp.transpose(x, (1, 0, 2)).reshape(T * B, A)

    # Pad the scalar head to 128 lanes so the kernel's final store is a
    # lane-dense (unmasked) vst; lane 0 carries the real output.
    w4_pad = jnp.zeros((n3, OUT_PAD), jnp.float32).at[:, :1].set(w4)
    b4_pad = jnp.zeros((1, OUT_PAD), jnp.float32).at[:, :1].set(b4)

    vmem = pl.BlockSpec(memory_space=pltpu.MemorySpace.VMEM)
    out_padded = pl.pallas_call(
        lstm_mlp_kernel,
        out_shape=jax.ShapeDtypeStruct((B, OUT_PAD), jnp.float32),
        in_specs=[vmem] * 12,
        out_specs=vmem,
    )(x_tb, wih, whh, b, w1, b1, w2, b2, w3, b3, w4_pad, b4_pad)
    return out_padded[:, :1]


# ----------------------------------------------------------------------------
# Pure-JAX reference (mirrors torch.nn.LSTM + the Sequential head).
# ----------------------------------------------------------------------------
def reference_forward(x, wih, whh, b, w1, b1, w2, b2, w3, b3, w4, b4):
    B, T, A = x.shape
    H = whh.shape[0]
    h = jnp.zeros((B, H), jnp.float32)
    c = jnp.zeros((B, H), jnp.float32)
    for t in range(T):
        gates = x[:, t, :] @ wih + h @ whh + b
        i_g = jax.nn.sigmoid(gates[:, 0 * H:1 * H])
        f_g = jax.nn.sigmoid(gates[:, 1 * H:2 * H])
        g_g = jnp.tanh(gates[:, 2 * H:3 * H])
        o_g = jax.nn.sigmoid(gates[:, 3 * H:4 * H])
        c = f_g * c + i_g * g_g
        h = o_g * jnp.tanh(c)
    z = jnp.maximum(h @ w1 + b1, 0.0)
    z = jnp.maximum(z @ w2 + b2, 0.0)
    z = jnp.maximum(z @ w3 + b3, 0.0)
    return z @ w4 + b4


if __name__ == "__main__":
    # Small shapes consistent with the module:
    #   alphabet_size=8, len_max_molec (hidden)=32, layer sizes 64/32/16
    B, T = 2, 8
    A, H, N1, N2, N3 = 8, 32, 64, 32, 16

    key = jax.random.PRNGKey(0)
    ks = jax.random.split(key, 13)
    s = 1.0 / np.sqrt(H)

    def u(k, shape, scale):
        return jax.random.uniform(k, shape, jnp.float32, -scale, scale)

    # LSTM params (PyTorch layout transposed to (in, out)); the two biases
    # (bias_ih + bias_hh) are fused into one vector.
    wih = u(ks[0], (A, 4 * H), s)
    whh = u(ks[1], (H, 4 * H), s)
    b = u(ks[2], (1, 4 * H), s) + u(ks[3], (1, 4 * H), s)

    # MLP head params (transposed to (in, out)).
    w1 = u(ks[4], (H, N1), 1.0 / np.sqrt(H));   b1 = u(ks[5], (1, N1), 1.0 / np.sqrt(H))
    w2 = u(ks[6], (N1, N2), 1.0 / np.sqrt(N1)); b2 = u(ks[7], (1, N2), 1.0 / np.sqrt(N1))
    w3 = u(ks[8], (N2, N3), 1.0 / np.sqrt(N2)); b3 = u(ks[9], (1, N3), 1.0 / np.sqrt(N2))
    w4 = u(ks[10], (N3, 1), 1.0 / np.sqrt(N3)); b4 = u(ks[11], (1, 1), 1.0 / np.sqrt(N3))

    x = jax.random.normal(ks[12], (B, T, A), jnp.float32)

    params = (wih, whh, b, w1, b1, w2, b2, w3, b3, w4, b4)
    out = fc_model_forward(x, *params)
    out = jax.block_until_ready(out)

    ref = reference_forward(x, *params)
    assert out.shape == (B, 1), out.shape
    np.testing.assert_allclose(np.asarray(out), np.asarray(ref), rtol=1e-5, atol=1e-5)

    print("KERNEL_OK")
</pallas_src>

<mosaic_0001>
module attributes {stable_mosaic.version = 11 : i64} {
  func.func @lstm_mlp_kernel(%arg0: memref<16x8xf32, #tpu.memory_space<vmem>>, %arg1: memref<8x128xf32, #tpu.memory_space<vmem>>, %arg2: memref<32x128xf32, #tpu.memory_space<vmem>>, %arg3: memref<1x128xf32, #tpu.memory_space<vmem>>, %arg4: memref<32x64xf32, #tpu.memory_space<vmem>>, %arg5: memref<1x64xf32, #tpu.memory_space<vmem>>, %arg6: memref<64x32xf32, #tpu.memory_space<vmem>>, %arg7: memref<1x32xf32, #tpu.memory_space<vmem>>, %arg8: memref<32x16xf32, #tpu.memory_space<vmem>>, %arg9: memref<1x16xf32, #tpu.memory_space<vmem>>, %arg10: memref<16x128xf32, #tpu.memory_space<vmem>>, %arg11: memref<1x128xf32, #tpu.memory_space<vmem>>, %arg12: memref<2x128xf32, #tpu.memory_space<vmem>>) attributes {dimension_semantics = [], scalar_prefetch = 0 : i64, scratch_operands = 0 : i64, tpu.core_type = #tpu.core_type<tc>} {
    %c0 = arith.constant 0 : index
    %c0_0 = arith.constant 0 : index
    %0 = vector.load %arg2[%c0, %c0_0] : memref<32x128xf32, #tpu.memory_space<vmem>>, vector<32x128xf32>
    %c0_1 = arith.constant 0 : index
    %c0_2 = arith.constant 0 : index
    %1 = vector.load %arg0[%c0_1, %c0_2] : memref<16x8xf32, #tpu.memory_space<vmem>>, vector<16x8xf32>
    %c0_3 = arith.constant 0 : index
    %c0_4 = arith.constant 0 : index
    %2 = vector.load %arg1[%c0_3, %c0_4] : memref<8x128xf32, #tpu.memory_space<vmem>>, vector<8x128xf32>
    %cst = arith.constant dense<0.000000e+00> : vector<16x128xf32>
    %3 = tpu.matmul %1, %2, %cst {dimension_numbers = #tpu.dot_dimension_numbers<[1], [0], [0], [1], [0, 0, 1, 1], [], []>} : vector<16x8xf32>, vector<8x128xf32>, vector<16x128xf32> -> vector<16x128xf32>
    %c0_5 = arith.constant 0 : index
    %c0_6 = arith.constant 0 : index
    %4 = vector.load %arg3[%c0_5, %c0_6] : memref<1x128xf32, #tpu.memory_space<vmem>>, vector<1x128xf32>
    %5 = vector.broadcast %4 : vector<1x128xf32> to vector<16x128xf32>
    %6 = arith.addf %3, %5 : vector<16x128xf32>
    %cst_7 = arith.constant 0.000000e+00 : f32
    %7 = vector.broadcast %cst_7 : f32 to vector<2x32xf32>
    %cst_8 = arith.constant 0.000000e+00 : f32
    %8 = vector.broadcast %cst_8 : f32 to vector<2x32xf32>
    %9 = vector.extract_strided_slice %6 {offsets = [0, 0], sizes = [2, 128], strides = [1, 1]} : vector<16x128xf32> to vector<2x128xf32>
    %cst_9 = arith.constant dense<0.000000e+00> : vector<2x128xf32>
    %10 = tpu.matmul %7, %0, %cst_9 {dimension_numbers = #tpu.dot_dimension_numbers<[1], [0], [0], [1], [0, 0, 1, 1], [], []>} : vector<2x32xf32>, vector<32x128xf32>, vector<2x128xf32> -> vector<2x128xf32>
    %11 = arith.addf %9, %10 : vector<2x128xf32>
    %12 = arith.negf %11 : vector<2x128xf32>
    %13 = math.exp %12 : vector<2x128xf32>
    %cst_10 = arith.constant 1.000000e+00 : f32
    %14 = vector.broadcast %cst_10 : f32 to vector<2x128xf32>
    %15 = arith.addf %14, %13 : vector<2x128xf32>
    %16 = arith.divf %14, %15 : vector<2x128xf32>
    %17 = math.tanh %11 : vector<2x128xf32>
    %18 = vector.extract_strided_slice %16 {offsets = [0, 0], sizes = [2, 32], strides = [1, 1]} : vector<2x128xf32> to vector<2x32xf32>
    %19 = vector.extract_strided_slice %16 {offsets = [0, 32], sizes = [2, 32], strides = [1, 1]} : vector<2x128xf32> to vector<2x32xf32>
    %20 = vector.extract_strided_slice %17 {offsets = [0, 64], sizes = [2, 32], strides = [1, 1]} : vector<2x128xf32> to vector<2x32xf32>
    %21 = vector.extract_strided_slice %16 {offsets = [0, 96], sizes = [2, 32], strides = [1, 1]} : vector<2x128xf32> to vector<2x32xf32>
    %22 = arith.mulf %19, %8 : vector<2x32xf32>
    %23 = arith.mulf %18, %20 : vector<2x32xf32>
    %24 = arith.addf %22, %23 : vector<2x32xf32>
    %25 = math.tanh %24 : vector<2x32xf32>
    %26 = arith.mulf %21, %25 : vector<2x32xf32>
    %27 = vector.extract_strided_slice %6 {offsets = [2, 0], sizes = [2, 128], strides = [1, 1]} : vector<16x128xf32> to vector<2x128xf32>
    %cst_11 = arith.constant dense<0.000000e+00> : vector<2x128xf32>
    %28 = tpu.matmul %26, %0, %cst_11 {dimension_numbers = #tpu.dot_dimension_numbers<[1], [0], [0], [1], [0, 0, 1, 1], [], []>} : vector<2x32xf32>, vector<32x128xf32>, vector<2x128xf32> -> vector<2x128xf32>
    %29 = arith.addf %27, %28 : vector<2x128xf32>
    %30 = arith.negf %29 : vector<2x128xf32>
    %31 = math.exp %30 : vector<2x128xf32>
    %cst_12 = arith.constant 1.000000e+00 : f32
    %32 = vector.broadcast %cst_12 : f32 to vector<2x128xf32>
    %33 = arith.addf %32, %31 : vector<2x128xf32>
    %34 = arith.divf %32, %33 : vector<2x128xf32>
    %35 = math.tanh %29 : vector<2x128xf32>
    %36 = vector.extract_strided_slice %34 {offsets = [0, 0], sizes = [2, 32], strides = [1, 1]} : vector<2x128xf32> to vector<2x32xf32>
    %37 = vector.extract_strided_slice %34 {offsets = [0, 32], sizes = [2, 32], strides = [1, 1]} : vector<2x128xf32> to vector<2x32xf32>
    %38 = vector.extract_strided_slice %35 {offsets = [0, 64], sizes = [2, 32], strides = [1, 1]} : vector<2x128xf32> to vector<2x32xf32>
    %39 = vector.extract_strided_slice %34 {offsets = [0, 96], sizes = [2, 32], strides = [1, 1]} : vector<2x128xf32> to vector<2x32xf32>
    %40 = arith.mulf %37, %24 : vector<2x32xf32>
    %41 = arith.mulf %36, %38 : vector<2x32xf32>
    %42 = arith.addf %40, %41 : vector<2x32xf32>
    %43 = math.tanh %42 : vector<2x32xf32>
    %44 = arith.mulf %39, %43 : vector<2x32xf32>
    %45 = vector.extract_strided_slice %6 {offsets = [4, 0], sizes = [2, 128], strides = [1, 1]} : vector<16x128xf32> to vector<2x128xf32>
    %cst_13 = arith.constant dense<0.000000e+00> : vector<2x128xf32>
    %46 = tpu.matmul %44, %0, %cst_13 {dimension_numbers = #tpu.dot_dimension_numbers<[1], [0], [0], [1], [0, 0, 1, 1], [], []>} : vector<2x32xf32>, vector<32x128xf32>, vector<2x128xf32> -> vector<2x128xf32>
    %47 = arith.addf %45, %46 : vector<2x128xf32>
    %48 = arith.negf %47 : vector<2x128xf32>
    %49 = math.exp %48 : vector<2x128xf32>
    %cst_14 = arith.constant 1.000000e+00 : f32
    %50 = vector.broadcast %cst_14 : f32 to vector<2x128xf32>
    %51 = arith.addf %50, %49 : vector<2x128xf32>
    %52 = arith.divf %50, %51 : vector<2x128xf32>
    %53 = math.tanh %47 : vector<2x128xf32>
    %54 = vector.extract_strided_slice %52 {offsets = [0, 0], sizes = [2, 32], strides = [1, 1]} : vector<2x128xf32> to vector<2x32xf32>
    %55 = vector.extract_strided_slice %52 {offsets = [0, 32], sizes = [2, 32], strides = [1, 1]} : vector<2x128xf32> to vector<2x32xf32>
    %56 = vector.extract_strided_slice %53 {offsets = [0, 64], sizes = [2, 32], strides = [1, 1]} : vector<2x128xf32> to vector<2x32xf32>
    %57 = vector.extract_strided_slice %52 {offsets = [0, 96], sizes = [2, 32], strides = [1, 1]} : vector<2x128xf32> to vector<2x32xf32>
    %58 = arith.mulf %55, %42 : vector<2x32xf32>
    %59 = arith.mulf %54, %56 : vector<2x32xf32>
    %60 = arith.addf %58, %59 : vector<2x32xf32>
    %61 = math.tanh %60 : vector<2x32xf32>
    %62 = arith.mulf %57, %61 : vector<2x32xf32>
    %63 = vector.extract_strided_slice %6 {offsets = [6, 0], sizes = [2, 128], strides = [1, 1]} : vector<16x128xf32> to vector<2x128xf32>
    %cst_15 = arith.constant dense<0.000000e+00> : vector<2x128xf32>
    %64 = tpu.matmul %62, %0, %cst_15 {dimension_numbers = #tpu.dot_dimension_numbers<[1], [0], [0], [1], [0, 0, 1, 1], [], []>} : vector<2x32xf32>, vector<32x128xf32>, vector<2x128xf32> -> vector<2x128xf32>
    %65 = arith.addf %63, %64 : vector<2x128xf32>
    %66 = arith.negf %65 : vector<2x128xf32>
    %67 = math.exp %66 : vector<2x128xf32>
    %cst_16 = arith.constant 1.000000e+00 : f32
    %68 = vector.broadcast %cst_16 : f32 to vector<2x128xf32>
    %69 = arith.addf %68, %67 : vector<2x128xf32>
    %70 = arith.divf %68, %69 : vector<2x128xf32>
    %71 = math.tanh %65 : vector<2x128xf32>
    %72 = vector.extract_strided_slice %70 {offsets = [0, 0], sizes = [2, 32], strides = [1, 1]} : vector<2x128xf32> to vector<2x32xf32>
    %73 = vector.extract_strided_slice %70 {offsets = [0, 32], sizes = [2, 32], strides = [1, 1]} : vector<2x128xf32> to vector<2x32xf32>
    %74 = vector.extract_strided_slice %71 {offsets = [0, 64], sizes = [2, 32], strides = [1, 1]} : vector<2x128xf32> to vector<2x32xf32>
    %75 = vector.extract_strided_slice %70 {offsets = [0, 96], sizes = [2, 32], strides = [1, 1]} : vector<2x128xf32> to vector<2x32xf32>
    %76 = arith.mulf %73, %60 : vector<2x32xf32>
    %77 = arith.mulf %72, %74 : vector<2x32xf32>
    %78 = arith.addf %76, %77 : vector<2x32xf32>
    %79 = math.tanh %78 : vector<2x32xf32>
    %80 = arith.mulf %75, %79 : vector<2x32xf32>
    %81 = vector.extract_strided_slice %6 {offsets = [8, 0], sizes = [2, 128], strides = [1, 1]} : vector<16x128xf32> to vector<2x128xf32>
    %cst_17 = arith.constant dense<0.000000e+00> : vector<2x128xf32>
    %82 = tpu.matmul %80, %0, %cst_17 {dimension_numbers = #tpu.dot_dimension_numbers<[1], [0], [0], [1], [0, 0, 1, 1], [], []>} : vector<2x32xf32>, vector<32x128xf32>, vector<2x128xf32> -> vector<2x128xf32>
    %83 = arith.addf %81, %82 : vector<2x128xf32>
    %84 = arith.negf %83 : vector<2x128xf32>
    %85 = math.exp %84 : vector<2x128xf32>
    %cst_18 = arith.constant 1.000000e+00 : f32
    %86 = vector.broadcast %cst_18 : f32 to vector<2x128xf32>
    %87 = arith.addf %86, %85 : vector<2x128xf32>
    %88 = arith.divf %86, %87 : vector<2x128xf32>
    %89 = math.tanh %83 : vector<2x128xf32>
    %90 = vector.extract_strided_slice %88 {offsets = [0, 0], sizes = [2, 32], strides = [1, 1]} : vector<2x128xf32> to vector<2x32xf32>
    %91 = vector.extract_strided_slice %88 {offsets = [0, 32], sizes = [2, 32], strides = [1, 1]} : vector<2x128xf32> to vector<2x32xf32>
    %92 = vector.extract_strided_slice %89 {offsets = [0, 64], sizes = [2, 32], strides = [1, 1]} : vector<2x128xf32> to vector<2x32xf32>
    %93 = vector.extract_strided_slice %88 {offsets = [0, 96], sizes = [2, 32], strides = [1, 1]} : vector<2x128xf32> to vector<2x32xf32>
    %94 = arith.mulf %91, %78 : vector<2x32xf32>
    %95 = arith.mulf %90, %92 : vector<2x32xf32>
    %96 = arith.addf %94, %95 : vector<2x32xf32>
    %97 = math.tanh %96 : vector<2x32xf32>
    %98 = arith.mulf %93, %97 : vector<2x32xf32>
    %99 = vector.extract_strided_slice %6 {offsets = [10, 0], sizes = [2, 128], strides = [1, 1]} : vector<16x128xf32> to vector<2x128xf32>
    %cst_19 = arith.constant dense<0.000000e+00> : vector<2x128xf32>
    %100 = tpu.matmul %98, %0, %cst_19 {dimension_numbers = #tpu.dot_dimension_numbers<[1], [0], [0], [1], [0, 0, 1, 1], [], []>} : vector<2x32xf32>, vector<32x128xf32>, vector<2x128xf32> -> vector<2x128xf32>
    %101 = arith.addf %99, %100 : vector<2x128xf32>
    %102 = arith.negf %101 : vector<2x128xf32>
    %103 = math.exp %102 : vector<2x128xf32>
    %cst_20 = arith.constant 1.000000e+00 : f32
    %104 = vector.broadcast %cst_20 : f32 to vector<2x128xf32>
    %105 = arith.addf %104, %103 : vector<2x128xf32>
    %106 = arith.divf %104, %105 : vector<2x128xf32>
    %107 = math.tanh %101 : vector<2x128xf32>
    %108 = vector.extract_strided_slice %106 {offsets = [0, 0], sizes = [2, 32], strides = [1, 1]} : vector<2x128xf32> to vector<2x32xf32>
    %109 = vector.extract_strided_slice %106 {offsets = [0, 32], sizes = [2, 32], strides = [1, 1]} : vector<2x128xf32> to vector<2x32xf32>
    %110 = vector.extract_strided_slice %107 {offsets = [0, 64], sizes = [2, 32], strides = [1, 1]} : vector<2x128xf32> to vector<2x32xf32>
    %111 = vector.extract_strided_slice %106 {offsets = [0, 96], sizes = [2, 32], strides = [1, 1]} : vector<2x128xf32> to vector<2x32xf32>
    %112 = arith.mulf %109, %96 : vector<2x32xf32>
    %113 = arith.mulf %108, %110 : vector<2x32xf32>
    %114 = arith.addf %112, %113 : vector<2x32xf32>
    %115 = math.tanh %114 : vector<2x32xf32>
    %116 = arith.mulf %111, %115 : vector<2x32xf32>
    %117 = vector.extract_strided_slice %6 {offsets = [12, 0], sizes = [2, 128], strides = [1, 1]} : vector<16x128xf32> to vector<2x128xf32>
    %cst_21 = arith.constant dense<0.000000e+00> : vector<2x128xf32>
    %118 = tpu.matmul %116, %0, %cst_21 {dimension_numbers = #tpu.dot_dimension_numbers<[1], [0], [0], [1], [0, 0, 1, 1], [], []>} : vector<2x32xf32>, vector<32x128xf32>, vector<2x128xf32> -> vector<2x128xf32>
    %119 = arith.addf %117, %118 : vector<2x128xf32>
    %120 = arith.negf %119 : vector<2x128xf32>
    %121 = math.exp %120 : vector<2x128xf32>
    %cst_22 = arith.constant 1.000000e+00 : f32
    %122 = vector.broadcast %cst_22 : f32 to vector<2x128xf32>
    %123 = arith.addf %122, %121 : vector<2x128xf32>
    %124 = arith.divf %122, %123 : vector<2x128xf32>
    %125 = math.tanh %119 : vector<2x128xf32>
    %126 = vector.extract_strided_slice %124 {offsets = [0, 0], sizes = [2, 32], strides = [1, 1]} : vector<2x128xf32> to vector<2x32xf32>
    %127 = vector.extract_strided_slice %124 {offsets = [0, 32], sizes = [2, 32], strides = [1, 1]} : vector<2x128xf32> to vector<2x32xf32>
    %128 = vector.extract_strided_slice %125 {offsets = [0, 64], sizes = [2, 32], strides = [1, 1]} : vector<2x128xf32> to vector<2x32xf32>
    %129 = vector.extract_strided_slice %124 {offsets = [0, 96], sizes = [2, 32], strides = [1, 1]} : vector<2x128xf32> to vector<2x32xf32>
    %130 = arith.mulf %127, %114 : vector<2x32xf32>
    %131 = arith.mulf %126, %128 : vector<2x32xf32>
    %132 = arith.addf %130, %131 : vector<2x32xf32>
    %133 = math.tanh %132 : vector<2x32xf32>
    %134 = arith.mulf %129, %133 : vector<2x32xf32>
    %135 = vector.extract_strided_slice %6 {offsets = [14, 0], sizes = [2, 128], strides = [1, 1]} : vector<16x128xf32> to vector<2x128xf32>
    %cst_23 = arith.constant dense<0.000000e+00> : vector<2x128xf32>
    %136 = tpu.matmul %134, %0, %cst_23 {dimension_numbers = #tpu.dot_dimension_numbers<[1], [0], [0], [1], [0, 0, 1, 1], [], []>} : vector<2x32xf32>, vector<32x128xf32>, vector<2x128xf32> -> vector<2x128xf32>
    %137 = arith.addf %135, %136 : vector<2x128xf32>
    %138 = arith.negf %137 : vector<2x128xf32>
    %139 = math.exp %138 : vector<2x128xf32>
    %cst_24 = arith.constant 1.000000e+00 : f32
    %140 = vector.broadcast %cst_24 : f32 to vector<2x128xf32>
    %141 = arith.addf %140, %139 : vector<2x128xf32>
    %142 = arith.divf %140, %141 : vector<2x128xf32>
    %143 = math.tanh %137 : vector<2x128xf32>
    %144 = vector.extract_strided_slice %142 {offsets = [0, 0], sizes = [2, 32], strides = [1, 1]} : vector<2x128xf32> to vector<2x32xf32>
    %145 = vector.extract_strided_slice %142 {offsets = [0, 32], sizes = [2, 32], strides = [1, 1]} : vector<2x128xf32> to vector<2x32xf32>
    %146 = vector.extract_strided_slice %143 {offsets = [0, 64], sizes = [2, 32], strides = [1, 1]} : vector<2x128xf32> to vector<2x32xf32>
    %147 = vector.extract_strided_slice %142 {offsets = [0, 96], sizes = [2, 32], strides = [1, 1]} : vector<2x128xf32> to vector<2x32xf32>
    %148 = arith.mulf %145, %132 : vector<2x32xf32>
    %149 = arith.mulf %144, %146 : vector<2x32xf32>
    %150 = arith.addf %148, %149 : vector<2x32xf32>
    %151 = math.tanh %150 : vector<2x32xf32>
    %152 = arith.mulf %147, %151 : vector<2x32xf32>
    %c0_25 = arith.constant 0 : index
    %c0_26 = arith.constant 0 : index
    %153 = vector.load %arg4[%c0_25, %c0_26] : memref<32x64xf32, #tpu.memory_space<vmem>>, vector<32x64xf32>
    %cst_27 = arith.constant dense<0.000000e+00> : vector<2x64xf32>
    %154 = tpu.matmul %152, %153, %cst_27 {dimension_numbers = #tpu.dot_dimension_numbers<[1], [0], [0], [1], [0, 0, 1, 1], [], []>} : vector<2x32xf32>, vector<32x64xf32>, vector<2x64xf32> -> vector<2x64xf32>
    %c0_28 = arith.constant 0 : index
    %c0_29 = arith.constant 0 : index
    %155 = vector.load %arg5[%c0_28, %c0_29] : memref<1x64xf32, #tpu.memory_space<vmem>>, vector<1x64xf32>
    %156 = vector.broadcast %155 : vector<1x64xf32> to vector<2x64xf32>
    %157 = arith.addf %154, %156 : vector<2x64xf32>
    %cst_30 = arith.constant 0.000000e+00 : f32
    %158 = vector.broadcast %cst_30 : f32 to vector<2x64xf32>
    %159 = arith.maximumf %157, %158 : vector<2x64xf32>
    %c0_31 = arith.constant 0 : index
    %c0_32 = arith.constant 0 : index
    %160 = vector.load %arg6[%c0_31, %c0_32] : memref<64x32xf32, #tpu.memory_space<vmem>>, vector<64x32xf32>
    %cst_33 = arith.constant dense<0.000000e+00> : vector<2x32xf32>
    %161 = tpu.matmul %159, %160, %cst_33 {dimension_numbers = #tpu.dot_dimension_numbers<[1], [0], [0], [1], [0, 0, 1, 1], [], []>} : vector<2x64xf32>, vector<64x32xf32>, vector<2x32xf32> -> vector<2x32xf32>
    %c0_34 = arith.constant 0 : index
    %c0_35 = arith.constant 0 : index
    %162 = vector.load %arg7[%c0_34, %c0_35] : memref<1x32xf32, #tpu.memory_space<vmem>>, vector<1x32xf32>
    %163 = vector.broadcast %162 : vector<1x32xf32> to vector<2x32xf32>
    %164 = arith.addf %161, %163 : vector<2x32xf32>
    %cst_36 = arith.constant 0.000000e+00 : f32
    %165 = vector.broadcast %cst_36 : f32 to vector<2x32xf32>
    %166 = arith.maximumf %164, %165 : vector<2x32xf32>
    %c0_37 = arith.constant 0 : index
    %c0_38 = arith.constant 0 : index
    %167 = vector.load %arg8[%c0_37, %c0_38] : memref<32x16xf32, #tpu.memory_space<vmem>>, vector<32x16xf32>
    %cst_39 = arith.constant dense<0.000000e+00> : vector<2x16xf32>
    %168 = tpu.matmul %166, %167, %cst_39 {dimension_numbers = #tpu.dot_dimension_numbers<[1], [0], [0], [1], [0, 0, 1, 1], [], []>} : vector<2x32xf32>, vector<32x16xf32>, vector<2x16xf32> -> vector<2x16xf32>
    %c0_40 = arith.constant 0 : index
    %c0_41 = arith.constant 0 : index
    %169 = vector.load %arg9[%c0_40, %c0_41] : memref<1x16xf32, #tpu.memory_space<vmem>>, vector<1x16xf32>
    %170 = vector.broadcast %169 : vector<1x16xf32> to vector<2x16xf32>
    %171 = arith.addf %168, %170 : vector<2x16xf32>
    %cst_42 = arith.constant 0.000000e+00 : f32
    %172 = vector.broadcast %cst_42 : f32 to vector<2x16xf32>
    %173 = arith.maximumf %171, %172 : vector<2x16xf32>
    %c0_43 = arith.constant 0 : index
    %c0_44 = arith.constant 0 : index
    %174 = vector.load %arg10[%c0_43, %c0_44] : memref<16x128xf32, #tpu.memory_space<vmem>>, vector<16x128xf32>
    %cst_45 = arith.constant dense<0.000000e+00> : vector<2x128xf32>
    %175 = tpu.matmul %173, %174, %cst_45 {dimension_numbers = #tpu.dot_dimension_numbers<[1], [0], [0], [1], [0, 0, 1, 1], [], []>} : vector<2x16xf32>, vector<16x128xf32>, vector<2x128xf32> -> vector<2x128xf32>
    %c0_46 = arith.constant 0 : index
    %c0_47 = arith.constant 0 : index
    %176 = vector.load %arg11[%c0_46, %c0_47] : memref<1x128xf32, #tpu.memory_space<vmem>>, vector<1x128xf32>
    %177 = vector.broadcast %176 : vector<1x128xf32> to vector<2x128xf32>
    %178 = arith.addf %175, %177 : vector<2x128xf32>
    %c0_48 = arith.constant 0 : index
    %c0_49 = arith.constant 0 : index
    %179 = vector.load %arg12[%c0_48, %c0_49] : memref<2x128xf32, #tpu.memory_space<vmem>>, vector<2x128xf32>
    tpu.vector_store %arg12[%c0_48, %c0_49], %178 {strides = array<i32>} : memref<2x128xf32, #tpu.memory_space<vmem>>, vector<2x128xf32>,
    return
  }
}

</mosaic_0001>

<bundles_post_ra>
// kernel: fc_model_forward.1
= control target key start
LH: loop header
LB: loop body
LE: loop exit
PB: predicated region body
PF: predicated region fallthrough
CT: control target
= control target key end

     0   :  { %vm52_vm0 = vcmask 64512   ;;  %v861_v6 = vmov 0.0   ;;  %s862_s15 = smov 64   ;;  %vm82_vm5 = vcmask 261120   ;;  %s1081_s2 = inlined_call_operand.vmem [shape: f32[32,128], index: 2, kind: input, shape index: {}]   ;;  %s1082_s1 = inlined_call_operand.vmem [shape: f32[8,128], index: 1, kind: input, shape index: {}]   ;;  %s1083_s0 = inlined_call_operand.vmem [shape: f32[16,8], index: 0, kind: input, shape index: {}]   ;;  %s1084_s3 = inlined_call_operand.vmem [shape: f32[1,128], index: 3, kind: input, shape index: {}]   ;;  %s1085_s4 = inlined_call_operand.vmem [shape: f32[32,64], index: 4, kind: input, shape index: {}]   ;;  %s1086_s5 = inlined_call_operand.vmem [shape: f32[1,64], index: 5, kind: input, shape index: {}]   ;;  %s1087_s6 = inlined_call_operand.vmem [shape: f32[64,32], index: 6, kind: input, shape index: {}]   ;;  %s1088_s7 = inlined_call_operand.vmem [shape: f32[1,32], index: 7, kind: input, shape index: {}]   ;;  %s1089_s8 = inlined_call_operand.vmem [shape: f32[32,16], index: 8, kind: input, shape index: {}]   ;;  %s1090_s9 = inlined_call_operand.vmem [shape: f32[1,16], index: 9, kind: input, shape index: {}]   ;;  %s1091_s10 = inlined_call_operand.vmem [shape: f32[16,128], index: 10, kind: input, shape index: {}]   ;;  %s1092_s11 = inlined_call_operand.vmem [shape: f32[1,128], index: 11, kind: input, shape index: {}]   ;;  %s1093_s12 = inlined_call_operand.vmem [shape: f32[2,128], index: 12, kind: output, shape index: {}]  }
   0x1   :  { %v44_v0 = vld [vmem:[%s1081_s2 + $0x18] sm:$0xff]  ;;  %v43_v1 = vld [vmem:[%s1081_s2 + $0x10] sm:$0xff]  ;;  %v47_v2 = vld [vmem:[%s1082_s1] sm:$0xff] }
   0x2   :  { %98 = vmatpush.msra.mxu1 %v44_v0  ;;  %74 = vmatpush.msra.mxu0 %v47_v2  ;;  %v45_v3 = vld [vmem:[%s1083_s0] sm:$0xff]  ;;  %v42_v4 = vld [vmem:[%s1081_s2 + $0x8] sm:$0xff] }
   0x3   :  { %768 = vmatmul.msk.f32.vlgmr.msra.gmra.mxu0 %vm52_vm0, %v45_v3  ;;  %161 = vmatpush.msra.mxu2 %v44_v0  ;;  %v41_v5 = vld [vmem:[%s1081_s2] sm:$0xff] }
   0x4   :  { %99 = vmatpush.msra.mxu1 %v43_v1  ;;  %231 = vmatpush.msra.mxu3 %v44_v0  ;;  %v951_v7 = vld [vmem:[%s1084_s3] ss:$0 sm:$0xff]  ;;  %s863_s3 = smov 32  }
   0x5   :  { %162 = vmatpush.msra.mxu2 %v43_v1  ;;  %507 = vmatpush.msrb.mxu0 %v44_v0 }
   0x6   :  { %100 = vmatpush.msra.mxu1 %v42_v4  ;;  %232 = vmatpush.msra.mxu3 %v43_v1 }
   0x7   :  { %163 = vmatpush.msra.mxu2 %v42_v4  ;;  %508 = vmatpush.msrb.mxu0 %v43_v1 }
   0x8   :  { %101 = vmatpush.msra.mxu1 %v41_v5  ;;  %233 = vmatpush.msra.mxu3 %v42_v4 }
   0x9   :  { %102 = vmatmul.f32.vlgmr.msra.gmra.mxu1 %v861_v6  ;;  %164 = vmatpush.msra.mxu2 %v41_v5 }
   0xa   :  { %234 = vmatpush.msra.mxu3 %v41_v5  ;;  %301 = vmatpush.msrb.mxu1 %v44_v0 }
   0xb   :  { %371 = vmatpush.msrb.mxu2 %v44_v0  ;;  %509 = vmatpush.msrb.mxu0 %v42_v4 }
   0xc   :  { %437 = vmatpush.msrb.mxu3 %v44_v0  ;;  %302 = vmatpush.msrb.mxu1 %v43_v1 }
   0xd   :  { %372 = vmatpush.msrb.mxu2 %v43_v1  ;;  %510 = vmatpush.msrb.mxu0 %v41_v5 }
   0xe   :  { %438 = vmatpush.msrb.mxu3 %v43_v1  ;;  %303 = vmatpush.msrb.mxu1 %v42_v4 }
   0xf   :  { %373 = vmatpush.msrb.mxu2 %v42_v4 }
  0x10   :  { %439 = vmatpush.msrb.mxu3 %v42_v4  ;;  %304 = vmatpush.msrb.mxu1 %v41_v5 }
  0x11   :  { %374 = vmatpush.msrb.mxu2 %v41_v5 }
  0x12   :  { %440 = vmatpush.msrb.mxu3 %v41_v5  ;;  %577 = vmatpush.msra.mxu1 %v44_v0 }
  0x14   :  { %578 = vmatpush.msra.mxu1 %v43_v1 }
  0x16   :  { %579 = vmatpush.msra.mxu1 %v42_v4 }
  0x18   :  { %580 = vmatpush.msra.mxu1 %v41_v5 }
  0x80   :  { %v76_v8 = vpop.f32.mrf.mxu0 }
  0x81   :  { %v954_v9 = vadd.f32 %v951_v7, %v76_v8 }
  0x86   :  { %v103_v10 = vpop.f32.mrf.mxu1 }
  0x87   :  { %v106_v11 = vadd.f32 %v103_v10, %v954_v9 }
  0x89   :  { %797 = vtanh.f32 %v106_v11  ;;  %v770_v13 = vmul.f32 -1.442695, %v106_v11 }
  0x8b   :  { %799 = vpow2.f32 %v770_v13 }
  0x8f   :  { %v798_v12 = vpop.eup %797 }
  0x90   :  { %129 = vrot.lane.b32.xlu0 %v798_v12, %s862_s15 }
  0x91   :  { %v800_v14 = vpop.eup %799 }
  0x92   :  { %v110_v15 = vadd.f32 1.0, %v800_v14 }
  0x94   :  { %801 = vrcp.f32 %v110_v15  ;;  %v122_v21 = vand.u32 2147483648, %v110_v15  ;;  %vm116_vm2 = vweird.f32 %v110_v15  ;;  %v120_v22 = vand.u32 2147483647, %v110_v15 }
  0x96   :  { %v123_v24 = vor.u32 1.1754944e-38, %v122_v21  ;;  %vm121_vm4 = vcmp.eq.f32.partialorder %v120_v22, 8.507059e+37 }
  0x9a   :  { %v802_v16 = vpop.eup %801 }
  0x9b   :  { %v112_v17 = vmul.f32 %v802_v16, %v110_v15  ;;  %vm117_vm1 = vweird.f32 %v802_v16 }
  0x9c   :  { %vm118_vm3 = vmor %vm116_vm2, %vm117_vm1 }
  0x9d   :  { %v113_v18 = vsub.f32 1.0, %v112_v17 }
  0x9f   :  { %v114_v19 = vmul.f32 %v802_v16, %v113_v18 }
  0xa1   :  { %v115_v20 = vadd.f32 %v802_v16, %v114_v19 }
  0xa3   :  { %v119_v23 = vsel %vm118_vm3, %v802_v16, %v115_v20 }
  0xa4   :  { %v124_v26 = vsel %vm121_vm4, %v123_v24, %v119_v23 }
  0xa5   :  { %v127_v28 = vmul.f32 0.0, %v124_v26 }
 0x102   :  { %v130_v25 = vpop.permute.xlu0 %129 }
 0x103   :  { %v132_v27 = vmul.f32 %v130_v25, %v124_v26 }
 0x105   :  { %134 = vrot.lane.b32.xlu0 %v132_v27, %s863_s3 }
 0x177   :  { %v135_v29 = vpop.permute.xlu0 %134 }
 0x178   :  { %v137_v30 = vadd.f32 %v135_v29, %v127_v28 }
 0x17a   :  { %803 = vtanh.f32 %v137_v30  ;;  %v194_v54 = vrot.slane %v137_v30, 6 }
 0x180   :  { %v804_v31 = vpop.eup %803 }
 0x181   :  { %140 = vrot.lane.b32.xlu1 %v804_v31, %s862_s15 }
 0x1f3   :  { %v141_v32 = vpop.permute.xlu1 %140 }
 0x1f4   :  { %v143_v33 = vmul.f32 %v141_v32, %v124_v26 }
 0x1f6   :  { %145 = vrot.lane.b32.xlu1 %v143_v33, %s863_s3 }
 0x268   :  { %v146_v34 = vpop.permute.xlu1 %145 }
 0x269   :  { %771 = vmatmul.msk.f32.vlgmr.msra.gmra.mxu2 %vm82_vm5, %v146_v34 }
 0x2ec   :  { %v166_v35 = vpop.f32.mrf.mxu2 }
 0x2ed   :  { %v170_v36 = vrot.slane %v166_v35, 6 }
 0x2ef   :  { %v172_v37 = vadd.f32 %v170_v36, %v954_v9 }
 0x2f1   :  { %805 = vtanh.f32 %v172_v37  ;;  %v772_v39 = vmul.f32 -1.442695, %v172_v37 }
 0x2f3   :  { %807 = vpow2.f32 %v772_v39 }
 0x2f7   :  { %v806_v38 = vpop.eup %805 }
 0x2f8   :  { %198 = vrot.lane.b32.xlu2 %v806_v38, %s862_s15 }
 0x2f9   :  { %v808_v40 = vpop.eup %807 }
 0x2fa   :  { %v176_v41 = vadd.f32 1.0, %v808_v40 }
 0x2fc   :  { %809 = vrcp.f32 %v176_v41  ;;  %v188_v47 = vand.u32 2147483648, %v176_v41  ;;  %vm182_vm7 = vweird.f32 %v176_v41  ;;  %v186_v48 = vand.u32 2147483647, %v176_v41 }
 0x2fe   :  { %v189_v50 = vor.u32 1.1754944e-38, %v188_v47  ;;  %vm187_vm9 = vcmp.eq.f32.partialorder %v186_v48, 8.507059e+37 }
 0x302   :  { %v810_v42 = vpop.eup %809 }
 0x303   :  { %v178_v43 = vmul.f32 %v810_v42, %v176_v41  ;;  %vm183_vm6 = vweird.f32 %v810_v42 }
 0x304   :  { %vm184_vm8 = vmor %vm182_vm7, %vm183_vm6 }
 0x305   :  { %v179_v44 = vsub.f32 1.0, %v178_v43 }
 0x307   :  { %v180_v45 = vmul.f32 %v810_v42, %v179_v44 }
 0x309   :  { %v181_v46 = vadd.f32 %v810_v42, %v180_v45 }
 0x30b   :  { %v185_v49 = vsel %vm184_vm8, %v810_v42, %v181_v46 }
 0x30c   :  { %v190_v52 = vsel %vm187_vm9, %v189_v50, %v185_v49 }
 0x30d   :  { %v196_v55 = vmul.f32 %v194_v54, %v190_v52 }
 0x352   :  { %v199_v51 = vpop.permute.xlu2 %198 }
 0x353   :  { %v201_v53 = vmul.f32 %v199_v51, %v190_v52 }
 0x355   :  { %203 = vrot.lane.b32.xlu2 %v201_v53, %s863_s3 }
 0x3af   :  { %v204_v56 = vpop.permute.xlu2 %203 }
 0x3b0   :  { %v206_v57 = vadd.f32 %v204_v56, %v196_v55  ;;  %v46_v55 = vld [vmem:[%s1083_s0 + $0x8] sm:$0xff] }
 0x3b1   :  { %769 = vmatmul.msk.f32.gmra.mxu0 %vm52_vm0, %v46_v55 }
 0x3b2   :  { %811 = vtanh.f32 %v206_v57  ;;  %v264_v20 = vrot.slane %v206_v57, 6 }
 0x3b8   :  { %v812_v58 = vpop.eup %811 }
 0x3b9   :  { %209 = vrot.lane.b32.xlu0 %v812_v58, %s862_s15 }
 0x42b   :  { %v210_v59 = vpop.permute.xlu0 %209 }
 0x42c   :  { %v212_v60 = vmul.f32 %v210_v59, %v190_v52 }
 0x42e   :  { %v214_v61 = vrot.slane %v212_v60, 2  ;;  %v79_v57 = vpop.f32.mrf.mxu0 }
 0x42f   :  { %v985_v58 = vadd.f32 %v951_v7, %v79_v57 }
 0x430   :  { %215 = vrot.lane.b32.xlu1 %v214_v61, %s863_s3 }
 0x4a2   :  { %v216_v62 = vpop.permute.xlu1 %215 }
 0x4a3   :  { %773 = vmatmul.msk.f32.vlgmr.msra.gmra.mxu3 %vm82_vm5, %v216_v62 }
 0x526   :  { %v236_v63 = vpop.f32.mrf.mxu3 }
 0x527   :  { %v240_v0 = vrot.slane %v236_v63, 4 }
 0x529   :  { %v242_v1 = vadd.f32 %v240_v0, %v954_v9 }
 0x52b   :  { %813 = vtanh.f32 %v242_v1  ;;  %v774_v3 = vmul.f32 -1.442695, %v242_v1 }
 0x52d   :  { %815 = vpow2.f32 %v774_v3 }
 0x531   :  { %v814_v2 = vpop.eup %813 }
 0x532   :  { %268 = vrot.lane.b32.xlu2 %v814_v2, %s862_s15 }
 0x533   :  { %v816_v4 = vpop.eup %815 }
 0x534   :  { %v246_v5 = vadd.f32 1.0, %v816_v4 }
 0x536   :  { %817 = vrcp.f32 %v246_v5  ;;  %v258_v13 = vand.u32 2147483648, %v246_v5  ;;  %vm252_vm11 = vweird.f32 %v246_v5  ;;  %v256_v14 = vand.u32 2147483647, %v246_v5 }
 0x538   :  { %v259_v16 = vor.u32 1.1754944e-38, %v258_v13  ;;  %vm257_vm13 = vcmp.eq.f32.partialorder %v256_v14, 8.507059e+37 }
 0x53c   :  { %v818_v6 = vpop.eup %817 }
 0x53d   :  { %v248_v8 = vmul.f32 %v818_v6, %v246_v5  ;;  %vm253_vm10 = vweird.f32 %v818_v6 }
 0x53e   :  { %vm254_vm12 = vmor %vm252_vm11, %vm253_vm10 }
 0x53f   :  { %v249_v10 = vsub.f32 1.0, %v248_v8 }
 0x541   :  { %v250_v11 = vmul.f32 %v818_v6, %v249_v10 }
 0x543   :  { %v251_v12 = vadd.f32 %v818_v6, %v250_v11 }
 0x545   :  { %v255_v15 = vsel %vm254_vm12, %v818_v6, %v251_v12 }
 0x546   :  { %v260_v18 = vsel %vm257_vm13, %v259_v16, %v255_v15 }
 0x547   :  { %v266_v21 = vmul.f32 %v264_v20, %v260_v18 }
 0x58c   :  { %v269_v17 = vpop.permute.xlu2 %268 }
 0x58d   :  { %v271_v19 = vmul.f32 %v269_v17, %v260_v18 }
 0x58f   :  { %273 = vrot.lane.b32.xlu0 %v271_v19, %s863_s3 }
 0x601   :  { %v274_v22 = vpop.permute.xlu0 %273 }
 0x602   :  { %v276_v23 = vadd.f32 %v274_v22, %v266_v21 }
 0x604   :  { %819 = vtanh.f32 %v276_v23  ;;  %v334_v47 = vrot.slane %v276_v23, 6 }
 0x60a   :  { %v820_v24 = vpop.eup %819 }
 0x60b   :  { %279 = vrot.lane.b32.xlu1 %v820_v24, %s862_s15 }
 0x67d   :  { %v280_v25 = vpop.permute.xlu1 %279 }
 0x67e   :  { %v282_v26 = vmul.f32 %v280_v25, %v260_v18 }
 0x680   :  { %v284_v27 = vrot.slane %v282_v26, 4 }
 0x682   :  { %285 = vrot.lane.b32.xlu2 %v284_v27, %s863_s3 }
 0x6dc   :  { %v286_v28 = vpop.permute.xlu2 %285 }
 0x6dd   :  { %775 = vmatmul.msk.f32.vlgmr.msrb.gmra.mxu1 %vm82_vm5, %v286_v28 }
 0x75a   :  { %v306_v29 = vpop.f32.mrf.mxu1 }
 0x75b   :  { %v310_v30 = vrot.slane %v306_v29, 2 }
 0x75d   :  { %v312_v31 = vadd.f32 %v310_v30, %v954_v9 }
 0x75f   :  { %821 = vtanh.f32 %v312_v31  ;;  %v776_v33 = vmul.f32 -1.442695, %v312_v31 }
 0x761   :  { %823 = vpow2.f32 %v776_v33 }
 0x765   :  { %v822_v32 = vpop.eup %821 }
 0x766   :  { %338 = vrot.lane.b32.xlu0 %v822_v32, %s862_s15 }
 0x767   :  { %v824_v34 = vpop.eup %823 }
 0x768   :  { %v316_v35 = vadd.f32 1.0, %v824_v34 }
 0x76a   :  { %825 = vrcp.f32 %v316_v35  ;;  %v328_v41 = vand.u32 2147483648, %v316_v35  ;;  %vm322_vm15 = vweird.f32 %v316_v35  ;;  %v326_v42 = vand.u32 2147483647, %v316_v35 }
 0x76c   :  { %v329_v43 = vor.u32 1.1754944e-38, %v328_v41  ;;  %vm327_vm2 = vcmp.eq.f32.partialorder %v326_v42, 8.507059e+37 }
 0x770   :  { %v826_v36 = vpop.eup %825 }
 0x771   :  { %v318_v37 = vmul.f32 %v826_v36, %v316_v35  ;;  %vm323_vm14 = vweird.f32 %v826_v36 }
 0x772   :  { %vm324_vm1 = vmor %vm322_vm15, %vm323_vm14 }
 0x773   :  { %v319_v38 = vsub.f32 1.0, %v318_v37 }
 0x775   :  { %v320_v39 = vmul.f32 %v826_v36, %v319_v38 }
 0x777   :  { %v321_v40 = vadd.f32 %v826_v36, %v320_v39 }
 0x779   :  { %v325_v9 = vsel %vm324_vm1, %v826_v36, %v321_v40 }
 0x77a   :  { %v330_v45 = vsel %vm327_vm2, %v329_v43, %v325_v9 }
 0x77b   :  { %v336_v48 = vmul.f32 %v334_v47, %v330_v45 }
 0x7d8   :  { %v339_v44 = vpop.permute.xlu0 %338 }
 0x7d9   :  { %v341_v46 = vmul.f32 %v339_v44, %v330_v45 }
 0x7db   :  { %343 = vrot.lane.b32.xlu1 %v341_v46, %s863_s3 }
 0x84d   :  { %v344_v49 = vpop.permute.xlu1 %343 }
 0x84e   :  { %v346_v50 = vadd.f32 %v344_v49, %v336_v48 }
 0x850   :  { %827 = vtanh.f32 %v346_v50  ;;  %v401_v14 = vrot.slane %v346_v50, 6 }
 0x856   :  { %v828_v51 = vpop.eup %827 }
 0x857   :  { %349 = vrot.lane.b32.xlu2 %v828_v51, %s862_s15 }
 0x8b1   :  { %v350_v52 = vpop.permute.xlu2 %349 }
 0x8b2   :  { %v352_v53 = vmul.f32 %v350_v52, %v330_v45 }
 0x8b4   :  { %v354_v54 = vrot.slane %v352_v53, 6 }
 0x8b6   :  { %355 = vrot.lane.b32.xlu0 %v354_v54, %s863_s3 }
 0x928   :  { %v356_v56 = vpop.permute.xlu0 %355 }
 0x929   :  { %777 = vmatmul.msk.f32.vlgmr.msrb.gmra.mxu2 %vm82_vm5, %v356_v56 }
 0x9ac   :  { %v376_v59 = vpop.f32.mrf.mxu2 }
 0x9ad   :  { %v379_v60 = vadd.f32 %v376_v59, %v985_v58 }
 0x9af   :  { %829 = vtanh.f32 %v379_v60  ;;  %v778_v62 = vmul.f32 -1.442695, %v379_v60 }
 0x9b1   :  { %831 = vpow2.f32 %v778_v62 }
 0x9b5   :  { %v830_v61 = vpop.eup %829 }
 0x9b6   :  { %405 = vrot.lane.b32.xlu1 %v830_v61, %s862_s15 }
 0x9b7   :  { %v832_v63 = vpop.eup %831 }
 0x9b8   :  { %v383_v0 = vadd.f32 1.0, %v832_v63 }
 0x9ba   :  { %833 = vrcp.f32 %v383_v0  ;;  %v395_v7 = vand.u32 2147483648, %v383_v0  ;;  %vm389_vm3 = vweird.f32 %v383_v0  ;;  %v393_v6 = vand.u32 2147483647, %v383_v0 }
 0x9bc   :  { %v396_v10 = vor.u32 1.1754944e-38, %v395_v7  ;;  %vm394_vm6 = vcmp.eq.f32.partialorder %v393_v6, 8.507059e+37 }
 0x9c0   :  { %v834_v1 = vpop.eup %833 }
 0x9c1   :  { %v385_v2 = vmul.f32 %v834_v1, %v383_v0  ;;  %vm390_vm0 = vweird.f32 %v834_v1 }
 0x9c2   :  { %vm391_vm4 = vmor %vm389_vm3, %vm390_vm0  ;;  %vm676_vm3 = vcmask 523264  }
 0x9c3   :  { %v386_v3 = vsub.f32 1.0, %v385_v2 }
 0x9c5   :  { %v387_v4 = vmul.f32 %v834_v1, %v386_v3 }
 0x9c7   :  { %v388_v5 = vadd.f32 %v834_v1, %v387_v4 }
 0x9c9   :  { %v392_v8 = vsel %vm391_vm4, %v834_v1, %v388_v5  ;;  %vm739_vm4 = vcmask 130048  }
 0x9ca   :  { %v397_v12 = vsel %vm394_vm6, %v396_v10, %v392_v8 }
 0x9cb   :  { %v403_v15 = vmul.f32 %v401_v14, %v397_v12 }
 0xa28   :  { %v406_v11 = vpop.permute.xlu1 %405 }
 0xa29   :  { %v408_v13 = vmul.f32 %v406_v11, %v397_v12 }
 0xa2b   :  { %410 = vrot.lane.b32.xlu2 %v408_v13, %s863_s3 }
 0xa85   :  { %v411_v16 = vpop.permute.xlu2 %410 }
 0xa86   :  { %v413_v17 = vadd.f32 %v411_v16, %v403_v15 }
 0xa88   :  { %835 = vtanh.f32 %v413_v17  ;;  %v470_v41 = vrot.slane %v413_v17, 6 }
 0xa8e   :  { %v836_v18 = vpop.eup %835 }
 0xa8f   :  { %416 = vrot.lane.b32.xlu0 %v836_v18, %s862_s15 }
 0xb01   :  { %v417_v19 = vpop.permute.xlu0 %416 }
 0xb02   :  { %v419_v20 = vmul.f32 %v417_v19, %v397_v12 }
 0xb04   :  { %421 = vrot.lane.b32.xlu1 %v419_v20, %s863_s3 }
 0xb76   :  { %v422_v21 = vpop.permute.xlu1 %421 }
 0xb77   :  { %779 = vmatmul.msk.f32.vlgmr.msrb.gmra.mxu3 %vm82_vm5, %v422_v21 }
 0xbfa   :  { %v442_v22 = vpop.f32.mrf.mxu3 }
 0xbfb   :  { %v446_v23 = vrot.slane %v442_v22, 6 }
 0xbfd   :  { %v448_v24 = vadd.f32 %v446_v23, %v985_v58 }
 0xbff   :  { %837 = vtanh.f32 %v448_v24  ;;  %v780_v26 = vmul.f32 -1.442695, %v448_v24 }
 0xc01   :  { %839 = vpow2.f32 %v780_v26 }
 0xc05   :  { %v838_v25 = vpop.eup %837 }
 0xc06   :  { %474 = vrot.lane.b32.xlu2 %v838_v25, %s862_s15 }
 0xc07   :  { %v840_v27 = vpop.eup %839 }
 0xc08   :  { %v452_v28 = vadd.f32 1.0, %v840_v27 }
 0xc0a   :  { %841 = vrcp.f32 %v452_v28  ;;  %v464_v34 = vand.u32 2147483648, %v452_v28  ;;  %vm458_vm8 = vweird.f32 %v452_v28  ;;  %v462_v35 = vand.u32 2147483647, %v452_v28 }
 0xc0c   :  { %v465_v37 = vor.u32 1.1754944e-38, %v464_v34  ;;  %vm463_vm10 = vcmp.eq.f32.partialorder %v462_v35, 8.507059e+37 }
 0xc10   :  { %v842_v29 = vpop.eup %841 }
 0xc11   :  { %v454_v30 = vmul.f32 %v842_v29, %v452_v28  ;;  %vm459_vm7 = vweird.f32 %v842_v29 }
 0xc12   :  { %vm460_vm9 = vmor %vm458_vm8, %vm459_vm7 }
 0xc13   :  { %v455_v31 = vsub.f32 1.0, %v454_v30 }
 0xc15   :  { %v456_v32 = vmul.f32 %v842_v29, %v455_v31 }
 0xc17   :  { %v457_v33 = vadd.f32 %v842_v29, %v456_v32 }
 0xc19   :  { %v461_v36 = vsel %vm460_vm9, %v842_v29, %v457_v33 }
 0xc1a   :  { %v466_v39 = vsel %vm463_vm10, %v465_v37, %v461_v36 }
 0xc1b   :  { %v472_v42 = vmul.f32 %v470_v41, %v466_v39  ;;  %v629_v41 = vld [vmem:[%s1085_s4] sm:$0xff] }
 0xc60   :  { %v475_v38 = vpop.permute.xlu2 %474 }
 0xc61   :  { %v477_v40 = vmul.f32 %v475_v38, %v466_v39  ;;  %v632_v38 = vld [vmem:[%s1085_s4 + $0x18] sm:$0xff] }
 0xc62   :  { %655 = vmatpush.msra.mxu2 %v632_v38 }
 0xc63   :  { %479 = vrot.lane.b32.xlu0 %v477_v40, %s863_s3  ;;  %v630_v40 = vld [vmem:[%s1085_s4 + $0x8] sm:$0xff] }
 0xcd5   :  { %v480_v9 = vpop.permute.xlu0 %479 }
 0xcd6   :  { %v482_v43 = vadd.f32 %v480_v9, %v472_v42 }
 0xcd8   :  { %843 = vtanh.f32 %v482_v43  ;;  %v540_v5 = vrot.slane %v482_v43, 6 }
 0xcde   :  { %v844_v44 = vpop.eup %843 }
 0xcdf   :  { %485 = vrot.lane.b32.xlu1 %v844_v44, %s862_s15  ;;  %v671_v44 = vld [vmem:[%s1087_s6 + $0x38] sm:$0xff] }
 0xce0   :  { %688 = vmatpush.msra.mxu3 %v671_v44 }
 0xd51   :  { %v486_v45 = vpop.permute.xlu1 %485 }
 0xd52   :  { %v488_v46 = vmul.f32 %v486_v45, %v466_v39  ;;  %v631_v39 = vld [vmem:[%s1085_s4 + $0x10] sm:$0xff] }
 0xd53   :  { %656 = vmatpush.msra.mxu2 %v631_v39  ;;  %v670_v45 = vld [vmem:[%s1087_s6 + $0x30] sm:$0xff] }
 0xd54   :  { %v490_v47 = vrot.slane %v488_v46, 2  ;;  %v669_v46 = vld [vmem:[%s1087_s6 + $0x28] sm:$0xff]  ;;  %689 = vmatpush.msra.mxu3 %v670_v45 }
 0xd55   :  { %657 = vmatpush.msra.mxu2 %v630_v40 }
 0xd56   :  { %491 = vrot.lane.b32.xlu2 %v490_v47, %s863_s3  ;;  %v668_v47 = vld [vmem:[%s1087_s6 + $0x20] sm:$0xff]  ;;  %690 = vmatpush.msra.mxu3 %v669_v46 }
 0xd57   :  { %658 = vmatpush.msra.mxu2 %v629_v41 }
 0xd58   :  { %691 = vmatpush.msra.mxu3 %v668_v47 }
 0xdb0   :  { %v492_v48 = vpop.permute.xlu2 %491 }
 0xdb1   :  { %781 = vmatmul.msk.f32.vlgmr.msrb.gmra.mxu0 %vm82_vm5, %v492_v48  ;;  %v667_v48 = vld [vmem:[%s1087_s6 + $0x18] sm:$0xff] }
 0xdb2   :  { %692 = vmatpush.msra.mxu3 %v667_v48 }
 0xe2e   :  { %v512_v49 = vpop.f32.mrf.mxu0 }
 0xe2f   :  { %v516_v50 = vrot.slane %v512_v49, 4 }
 0xe31   :  { %v518_v51 = vadd.f32 %v516_v50, %v985_v58  ;;  %v666_v50 = vld [vmem:[%s1087_s6 + $0x10] sm:$0xff] }
 0xe32   :  { %693 = vmatpush.msra.mxu3 %v666_v50 }
 0xe33   :  { %845 = vtanh.f32 %v518_v51  ;;  %v782_v53 = vmul.f32 -1.442695, %v518_v51  ;;  %v665_v51 = vld [vmem:[%s1087_s6 + $0x8] sm:$0xff] }
 0xe34   :  { %694 = vmatpush.msra.mxu3 %v665_v51 }
 0xe35   :  { %847 = vpow2.f32 %v782_v53  ;;  %v704_v53 = vld [vmem:[%s1089_s8 + $0x18] sm:$0xff] }
 0xe36   :  { %724 = vmatpush.msra.mxu0 %v704_v53 }
 0xe39   :  { %v846_v52 = vpop.eup %845 }
 0xe3a   :  { %544 = vrot.lane.b32.xlu0 %v846_v52, %s862_s15  ;;  %v664_v52 = vld [vmem:[%s1087_s6] sm:$0xff] }
 0xe3b   :  { %v848_v54 = vpop.eup %847  ;;  %695 = vmatpush.msra.mxu3 %v664_v52 }
 0xe3c   :  { %v522_v55 = vadd.f32 1.0, %v848_v54  ;;  %v703_v54 = vld [vmem:[%s1089_s8 + $0x10] sm:$0xff] }
 0xe3d   :  { %725 = vmatpush.msra.mxu0 %v703_v54 }
 0xe3e   :  { %849 = vrcp.f32 %v522_v55  ;;  %v534_v62 = vand.u32 2147483648, %v522_v55  ;;  %vm528_vm12 = vweird.f32 %v522_v55  ;;  %v532_v63 = vand.u32 2147483647, %v522_v55 }
 0xe40   :  { %v535_v1 = vor.u32 1.1754944e-38, %v534_v62  ;;  %vm533_vm14 = vcmp.eq.f32.partialorder %v532_v63, 8.507059e+37  ;;  %v734_v62 = vld [vmem:[%s1091_s10 + $0x8] sm:$0xff]  ;;  %v794_v63 = vld [vmem:[%s1088_s7] ss:$0 sm:$0xff] }
 0xe41   :  { %757 = vmatpush.msrb.mxu1 %v734_v62 }
 0xe44   :  { %v850_v56 = vpop.eup %849 }
 0xe45   :  { %v524_v57 = vmul.f32 %v850_v56, %v522_v55  ;;  %vm529_vm11 = vweird.f32 %v850_v56  ;;  %v793_v55 = vld [vmem:[%s1086_s5] ss:$0 sm:$0xff] }
 0xe46   :  { %vm530_vm13 = vmor %vm528_vm12, %vm529_vm11 }
 0xe47   :  { %v525_v59 = vsub.f32 1.0, %v524_v57 }
 0xe49   :  { %v526_v60 = vmul.f32 %v850_v56, %v525_v59 }
 0xe4b   :  { %v527_v61 = vadd.f32 %v850_v56, %v526_v60  ;;  %v702_v60 = vld [vmem:[%s1089_s8 + $0x8] sm:$0xff] }
 0xe4c   :  { %726 = vmatpush.msra.mxu0 %v702_v60 }
 0xe4d   :  { %v531_v0 = vsel %vm530_vm13, %v850_v56, %v527_v61  ;;  %v701_v61 = vld [vmem:[%s1089_s8] sm:$0xff] }
 0xe4e   :  { %v536_v3 = vsel %vm533_vm14, %v535_v1, %v531_v0  ;;  %727 = vmatpush.msra.mxu0 %v701_v61 }
 0xe4f   :  { %v542_v7 = vmul.f32 %v540_v5, %v536_v3 }
 0xeac   :  { %v545_v2 = vpop.permute.xlu0 %544 }
 0xead   :  { %v547_v4 = vmul.f32 %v545_v2, %v536_v3 }
 0xeaf   :  { %549 = vrot.lane.b32.xlu1 %v547_v4, %s863_s3  ;;  %v795_v4 = vld [vmem:[%s1090_s9] ss:$0 sm:$0xff] }
 0xf21   :  { %v550_v6 = vpop.permute.xlu1 %549 }
 0xf22   :  { %v552_v8 = vadd.f32 %v550_v6, %v542_v7 }
 0xf24   :  { %851 = vtanh.f32 %v552_v8  ;;  %v610_v33 = vrot.slane %v552_v8, 6  ;;  %v796_v8 = vld [vmem:[%s1092_s11] ss:$0 sm:$0xff] }
 0xf2a   :  { %v852_v10 = vpop.eup %851 }
 0xf2b   :  { %555 = vrot.lane.b32.xlu2 %v852_v10, %s862_s15 }
 0xf85   :  { %v556_v11 = vpop.permute.xlu2 %555 }
 0xf86   :  { %v558_v12 = vmul.f32 %v556_v11, %v536_v3  ;;  %v733_v3 = vld [vmem:[%s1091_s10] sm:$0xff] }
 0xf87   :  { %758 = vmatpush.msrb.mxu1 %v733_v3 }
 0xf88   :  { %v560_v13 = vrot.slane %v558_v12, 4 }
 0xf8a   :  { %561 = vrot.lane.b32.xlu0 %v560_v13, %s863_s3 }
 0xffc   :  { %v562_v14 = vpop.permute.xlu0 %561 }
 0xffd   :  { %783 = vmatmul.msk.f32.vlgmr.msra.gmra.mxu1 %vm82_vm5, %v562_v14 }
0x107a   :  { %v582_v15 = vpop.f32.mrf.mxu1 }
0x107b   :  { %v586_v16 = vrot.slane %v582_v15, 2 }
0x107d   :  { %v588_v17 = vadd.f32 %v586_v16, %v985_v58 }
0x107f   :  { %853 = vtanh.f32 %v588_v17  ;;  %v784_v19 = vmul.f32 -1.442695, %v588_v17 }
0x1081   :  { %855 = vpow2.f32 %v784_v19 }
0x1085   :  { %v854_v18 = vpop.eup %853 }
0x1086   :  { %614 = vrot.lane.b32.xlu1 %v854_v18, %s862_s15 }
0x1087   :  { %v856_v20 = vpop.eup %855 }
0x1088   :  { %v592_v21 = vadd.f32 1.0, %v856_v20 }
0x108a   :  { %857 = vrcp.f32 %v592_v21  ;;  %v604_v27 = vand.u32 2147483648, %v592_v21  ;;  %vm598_vm1 = vweird.f32 %v592_v21  ;;  %v602_v28 = vand.u32 2147483647, %v592_v21 }
0x108c   :  { %v605_v29 = vor.u32 1.1754944e-38, %v604_v27  ;;  %vm603_vm0 = vcmp.eq.f32.partialorder %v602_v28, 8.507059e+37 }
0x1090   :  { %v858_v22 = vpop.eup %857 }
0x1091   :  { %v594_v23 = vmul.f32 %v858_v22, %v592_v21  ;;  %vm599_vm15 = vweird.f32 %v858_v22 }
0x1092   :  { %vm600_vm2 = vmor %vm598_vm1, %vm599_vm15 }
0x1093   :  { %v595_v24 = vsub.f32 1.0, %v594_v23 }
0x1095   :  { %v596_v25 = vmul.f32 %v858_v22, %v595_v24 }
0x1097   :  { %v597_v26 = vadd.f32 %v858_v22, %v596_v25 }
0x1099   :  { %v601_v58 = vsel %vm600_vm2, %v858_v22, %v597_v26 }
0x109a   :  { %v606_v31 = vsel %vm603_vm0, %v605_v29, %v601_v58 }
0x109b   :  { %v612_v34 = vmul.f32 %v610_v33, %v606_v31 }
0x10f8   :  { %v615_v30 = vpop.permute.xlu1 %614 }
0x10f9   :  { %v617_v32 = vmul.f32 %v615_v30, %v606_v31 }
0x10fb   :  { %619 = vrot.lane.b32.xlu2 %v617_v32, %s863_s3 }
0x1155   :  { %v620_v35 = vpop.permute.xlu2 %619 }
0x1156   :  { %v622_v36 = vadd.f32 %v620_v35, %v612_v34 }
0x1158   :  { %859 = vtanh.f32 %v622_v36 }
0x115e   :  { %v860_v37 = vpop.eup %859 }
0x115f   :  { %625 = vrot.lane.b32.xlu0 %v860_v37, %s862_s15 }
0x11d1   :  { %v626_v42 = vpop.permute.xlu0 %625 }
0x11d2   :  { %v628_v9 = vmul.f32 %v626_v42, %v606_v31 }
0x11d4   :  { %v638_v43 = vrot.slane %v628_v9, 6 }
0x11d6   :  { %639 = vrot.lane.b32.xlu1 %v638_v43, %s863_s3 }
0x1248   :  { %v640_v49 = vpop.permute.xlu1 %639 }
0x1249   :  { %785 = vmatmul.msk.f32.vlgmr.msra.gmra.mxu2 %vm82_vm5, %v640_v49 }
0x12cc   :  { %v660_v56 = vpop.f32.mrf.mxu2 }
0x12cd   :  { %v661_v57 = vadd.f32 %v793_v55, %v660_v56 }
0x12cf   :  { %v663_v59 = vmax.f32 %v661_v57, 0.0 }
0x12d1   :  { %786 = vmatmul.msk.f32.vlgmr.msra.gmra.mxu3 %vm676_vm3, %v663_v59 }
0x1354   :  { %v697_v0 = vpop.f32.mrf.mxu3 }
0x1355   :  { %v698_v1 = vadd.f32 %v794_v63, %v697_v0 }
0x1357   :  { %v700_v2 = vmax.f32 %v698_v1, 0.0 }
0x1359   :  { %787 = vmatmul.msk.f32.vlgmr.msra.gmra.mxu0 %vm82_vm5, %v700_v2 }
0x13d6   :  { %v729_v5 = vpop.f32.mrf.mxu0 }
0x13d7   :  { %v730_v7 = vadd.f32 %v795_v4, %v729_v5 }
0x13d9   :  { %v732_v6 = vmax.f32 %v730_v7, 0.0 }
0x13db   :  { %788 = vmatmul.msk.f32.vlgmr.msrb.gmra.mxu1 %vm739_vm4, %v732_v6 }
0x1458   :  { %v760_v10 = vpop.f32.mrf.mxu1 }
0x1459   :  { %v761_v11 = vadd.f32 %v796_v8, %v760_v10 }
0x145b   :  { %763 = vst [vmem:[%s1093_s12] sm:$0x3] %v761_v11 }

</bundles_post_ra>
